<compile_context>
chip_gen: v6e
topology: v6e:2x2x1
jax: 0.10.0
libtpu: 0.0.40
codegen_flags: <defaults>
</compile_context>

<pallas_src>
import functools

import jax
import jax.numpy as jnp
from jax.experimental import pallas as pl
from jax.experimental.pallas import tpu as pltpu


def _round_up(x, m):
    return (x + m - 1) // m * m


def _largest_divisor_leq(n, cap):
    """Largest divisor of n that is <= cap (cap is small, loop is cheap)."""
    cap = max(1, min(cap, n))
    for k in range(cap, 0, -1):
        if n % k == 0:
            return k
    return 1


def _centerloss_kernel(label_ref, feat_ref, center_ref, out_ref, onehot_ref,
                       *, tb, td, k_pad, nd_inner, centers_resident):
    """One (batch-tile, d-group, D-tile) grid step.

    label_ref : VMEM (tb, 1)        int32, -1 marks padded rows
    feat_ref  : VMEM (tb, td)       feature tile
    center_ref: VMEM (k_pad, D_pad) resident centers (or (k_pad, td) slice)
    out_ref   : VMEM (8, 128)       f32 partial sums, resident across D axis
    onehot_ref: VMEM (tb, k_pad)    scratch, centers' dtype
    """
    dg = pl.program_id(1)
    di = pl.program_id(2)

    # First step of every D sweep: (re)build the one-hot gather matrix for this
    # batch tile and zero the partial accumulator.  Guarding on di == 0 only
    # (the "arbitrary" axis) keeps this correct even when the parallel axes are
    # sharded across TensorCores.
    @pl.when(di == 0)
    def _():
        lbl = label_ref[...]                                           # (tb, 1)
        cls = jax.lax.broadcasted_iota(jnp.int32, (tb, k_pad), 1)      # (tb, k_pad)
        onehot_ref[...] = (lbl == cls).astype(onehot_ref.dtype)
        out_ref[...] = jnp.zeros_like(out_ref)

    onehot = onehot_ref[...]                                           # (tb, k_pad)
    if centers_resident:
        base = (dg * nd_inner + di) * td                               # column offset

    n_lane_groups = td // 128
    n_row_groups = tb // 8
    naccs = min(8, n_lane_groups * n_row_groups)
    accs = [jnp.zeros((8, 128), jnp.float32) for _ in range(naccs)]

    idx = 0
    for g in range(n_lane_groups):
        # Gather centers[label] for one 128-lane column group on the MXU.
        # Padded rows have label == -1 -> all-zero one-hot row -> gathered == 0,
        # and their feat rows are zero, so they contribute nothing.
        if centers_resident:
            col = pl.multiple_of(base + g * 128, 128)
            c_cols = center_ref[:, pl.ds(col, 128)]                    # (k_pad, 128)
        else:
            c_cols = center_ref[:, g * 128:(g + 1) * 128]              # (k_pad, 128)
        gathered = jnp.dot(onehot, c_cols,
                           preferred_element_type=jnp.float32)         # (tb, 128) f32

        # Per (8, 128) vreg sub-block: one feat load, sub, square, accumulate.
        for r in range(n_row_groups):
            f = feat_ref[r * 8:(r + 1) * 8,
                         g * 128:(g + 1) * 128].astype(jnp.float32)
            diff = f - gathered[r * 8:(r + 1) * 8, :]
            accs[idx % naccs] = accs[idx % naccs] + diff * diff
            idx += 1

    # Pairwise tree-sum the round-robin accumulators; single out_ref update.
    while len(accs) > 1:
        nxt = [accs[i] + accs[i + 1] for i in range(0, len(accs) - 1, 2)]
        if len(accs) % 2:
            nxt.append(accs[-1])
        accs = nxt
    out_ref[...] += accs[0]


def center_loss(label, feat, centers, size_average=True,
                *, batch_tile=128, d_tile=4096):
    """Pallas implementation of CenterLoss.forward."""
    batch = feat.shape[0]
    feat2d = feat.reshape(batch, -1)
    feat_dim = feat2d.shape[1]
    num_classes = centers.shape[0]
    if feat_dim != centers.shape[1]:
        raise ValueError(
            "Center's dim: {0} should be equal to input feature's dim: {1}".format(
                centers.shape[1], feat_dim))

    batch_size = batch if size_average else 1
    inv_scale = 1.0 / (2.0 * float(batch_size))

    feat_bytes = jnp.dtype(feat2d.dtype).itemsize
    c_bytes = jnp.dtype(centers.dtype).itemsize

    # ---- tile selection (sublane/lane aligned; pads only to (8, 128)) ----
    b_pad = _round_up(batch, 8)
    tb = 8 * _largest_divisor_leq(b_pad // 8, max(1, batch_tile // 8))
    nb = b_pad // tb

    d_pad = _round_up(feat_dim, 128)
    k_pad = _round_up(num_classes, 8)

    # Centers stay fully VMEM-resident (fetched once) when they fit the budget.
    centers_resident = 2 * k_pad * d_pad * c_bytes <= 24 * 1024 * 1024
    # TODO(synk): for num_classes so large that neither the resident centers nor
    # a (k_pad, td) slice fits VMEM, switch to a scalar-prefetch per-row center
    # gather (num_scalar_prefetch=1) instead of the O(K) one-hot MXU gather.

    per_group_bytes = 2 * tb * 128 * feat_bytes            # double-buffered feat
    if not centers_resident:
        per_group_bytes += 2 * k_pad * 128 * c_bytes       # double-buffered slice
    feat_budget = 16 * 1024 * 1024
    cap_groups = min(max(1, d_tile // 128),
                     max(1, feat_budget // per_group_bytes))
    td = 128 * _largest_divisor_leq(d_pad // 128, cap_groups)
    nd = d_pad // td

    # Split the D range across two "parallel" blocks when there is only one
    # batch tile, so a second TensorCore (v7x) has independent work.
    n_dg = 2 if (nb < 2 and nd >= 2 and nd % 2 == 0) else 1
    nd_inner = nd // n_dg

    # ---- padding (at most 7 rows / 127 cols; no copy when already aligned) --
    if (b_pad, d_pad) != feat2d.shape:
        feat_p = jnp.zeros((b_pad, d_pad), feat2d.dtype).at[:batch, :feat_dim].set(feat2d)
    else:
        feat_p = feat2d
    if (k_pad, d_pad) != centers.shape:
        centers_p = jnp.zeros((k_pad, d_pad), centers.dtype).at[:num_classes, :feat_dim].set(centers)
    else:
        centers_p = centers
    label_p = jnp.full((b_pad, 1), -1, dtype=jnp.int32).at[:batch, 0].set(
        label.astype(jnp.int32))
    # TODO(synk): fully copy-free ragged handling (in-kernel row/col masks on
    # partial edge blocks) would avoid even these small pads.

    if centers_resident:
        centers_spec = pl.BlockSpec((k_pad, d_pad), lambda bi, dg, di: (0, 0))
    else:
        centers_spec = pl.BlockSpec((k_pad, td),
                                    lambda bi, dg, di: (0, dg * nd_inner + di))

    grid_spec = pltpu.PrefetchScalarGridSpec(
        num_scalar_prefetch=0,
        grid=(nb, n_dg, nd_inner),                       # reduction axis (D) last
        in_specs=[
            pl.BlockSpec((tb, 1), lambda bi, dg, di: (bi, 0)),                 # labels
            pl.BlockSpec((tb, td), lambda bi, dg, di: (bi, dg * nd_inner + di)),  # feat
            centers_spec,                                                       # centers
        ],
        out_specs=pl.BlockSpec((8, 128), lambda bi, dg, di: (bi * n_dg + dg, 0)),
        scratch_shapes=[pltpu.VMEM((tb, k_pad), centers.dtype)],                # one-hot
    )

    cost = pl.CostEstimate(
        flops=int(3 * b_pad * d_pad + 2 * b_pad * k_pad * d_pad),
        transcendentals=0,
        bytes_accessed=int(b_pad * d_pad * feat_bytes + k_pad * d_pad * c_bytes
                           + b_pad * 4 + nb * n_dg * 8 * 128 * 4))

    partials = pl.pallas_call(
        functools.partial(_centerloss_kernel, tb=tb, td=td, k_pad=k_pad,
                          nd_inner=nd_inner, centers_resident=centers_resident),
        grid_spec=grid_spec,
        out_shape=jax.ShapeDtypeStruct((nb * n_dg * 8, 128), jnp.float32),
        compiler_params=pltpu.CompilerParams(
            dimension_semantics=("parallel", "parallel", "arbitrary"),
            vmem_limit_bytes=48 * 1024 * 1024),
        cost_estimate=cost,
    )(label_p, feat_p, centers_p)

    # Tiny final reduction + scale in the wrapper (keeps both leading grid axes
    # parallel so megacore chips can shard them).
    return jnp.sum(partials) * jnp.float32(inv_scale)


if __name__ == "__main__":
    key = jax.random.PRNGKey(0)
    k_feat, k_label, k_centers = jax.random.split(key, 3)

    # Module hyper-params (deterministic, in-script init like torch.randn(...))
    num_classes = 10
    B, C, H, W = 2, 4, 16, 16
    feat_dim = C * H * W  # 1024

    feat = jax.random.normal(k_feat, (B, C, H, W), dtype=jnp.float32)
    label = jax.random.randint(k_label, (B,), 0, num_classes, dtype=jnp.int32)
    centers = jax.random.normal(k_centers, (num_classes, feat_dim),
                                dtype=jnp.float32)

    loss = center_loss(label, feat, centers, size_average=True)
    loss = jax.block_until_ready(loss)

    # Pure-JAX reference for correctness check.
    feat2d = feat.reshape(B, -1)
    ref = jnp.sum((feat2d - centers[label]) ** 2) / 2.0 / B

    assert jnp.allclose(loss, ref, rtol=1e-4, atol=1e-4), (loss, ref)
    print("KERNEL_OK")
</pallas_src>

<mosaic_0001>
module attributes {stable_mosaic.version = 11 : i64} {
  func.func @_centerloss_kernel(%arg0: i32, %arg1: i32, %arg2: i32, %arg3: memref<8x1xi32, #tpu.memory_space<vmem>>, %arg4: memref<8x1024xf32, #tpu.memory_space<vmem>>, %arg5: memref<16x1024xf32, #tpu.memory_space<vmem>>, %arg6: memref<8x128xf32, #tpu.memory_space<vmem>>, %arg7: memref<8x16xf32, #tpu.memory_space<vmem>>) attributes {dimension_semantics = [#tpu.dimension_semantics<parallel>, #tpu.dimension_semantics<parallel>, #tpu.dimension_semantics<arbitrary>], iteration_bounds = array<i64: 1, 1, 1>, scalar_prefetch = 0 : i64, scratch_operands = 1 : i64, tpu.core_type = #tpu.core_type<tc>, window_params = [{transform_indices = @transform_0, window_bounds = array<i64: 8, 1>}, {transform_indices = @transform_1, window_bounds = array<i64: 8, 1024>}, {pipeline_mode = #tpu.pipeline_mode<synchronous>, transform_indices = @transform_2, window_bounds = array<i64: 16, 1024>}, {transform_indices = @transform_3, window_bounds = array<i64: 8, 128>}]} {
    %c0_i32 = arith.constant 0 : i32
    %0 = arith.cmpi eq, %arg2, %c0_i32 : i32
    %1 = arith.extui %0 : i1 to i32
    %c0_i32_0 = arith.constant 0 : i32
    %2 = arith.cmpi ne, %1, %c0_i32_0 : i32
    scf.if %2 {
      %c0_39 = arith.constant 0 : index
      %c0_40 = arith.constant 0 : index
      %97 = vector.load %arg3[%c0_39, %c0_40] : memref<8x1xi32, #tpu.memory_space<vmem>>, vector<8x1xi32>
      %98 = tpu.iota {dimensions = array<i32: 1>} : vector<8x16xi32>
      %99 = vector.broadcast %97 : vector<8x1xi32> to vector<8x16xi32>
      %100 = arith.cmpi eq, %99, %98 : vector<8x16xi32>
      %101 = arith.extui %100 : vector<8x16xi1> to vector<8x16xi32>
      %102 = arith.sitofp %101 : vector<8x16xi32> to vector<8x16xf32>
      %c0_41 = arith.constant 0 : index
      %c0_42 = arith.constant 0 : index
      %103 = vector.load %arg7[%c0_41, %c0_42] : memref<8x16xf32, #tpu.memory_space<vmem>>, vector<8x16xf32>
      tpu.vector_store %arg7[%c0_41, %c0_42], %102 {strides = array<i32>} : memref<8x16xf32, #tpu.memory_space<vmem>>, vector<8x16xf32>,
      %cst_43 = arith.constant 0.000000e+00 : f32
      %104 = vector.broadcast %cst_43 : f32 to vector<8x128xf32>
      %c0_44 = arith.constant 0 : index
      %c0_45 = arith.constant 0 : index
      %105 = vector.load %arg6[%c0_44, %c0_45] : memref<8x128xf32, #tpu.memory_space<vmem>>, vector<8x128xf32>
      tpu.vector_store %arg6[%c0_44, %c0_45], %104 {strides = array<i32>} : memref<8x128xf32, #tpu.memory_space<vmem>>, vector<8x128xf32>,
    } else {
    }
    %c0 = arith.constant 0 : index
    %c0_1 = arith.constant 0 : index
    %3 = vector.load %arg7[%c0, %c0_1] : memref<8x16xf32, #tpu.memory_space<vmem>>, vector<8x16xf32>
    %c1_i32 = arith.constant 1 : i32
    %4 = arith.muli %arg1, %c1_i32 : i32
    %5 = arith.addi %4, %arg2 : i32
    %c1024_i32 = arith.constant 1024 : i32
    %6 = arith.muli %5, %c1024_i32 : i32
    %cst = arith.constant 0.000000e+00 : f32
    %7 = vector.broadcast %cst : f32 to vector<8x128xf32>
    %cst_2 = arith.constant 0.000000e+00 : f32
    %8 = vector.broadcast %cst_2 : f32 to vector<8x128xf32>
    %cst_3 = arith.constant 0.000000e+00 : f32
    %9 = vector.broadcast %cst_3 : f32 to vector<8x128xf32>
    %cst_4 = arith.constant 0.000000e+00 : f32
    %10 = vector.broadcast %cst_4 : f32 to vector<8x128xf32>
    %cst_5 = arith.constant 0.000000e+00 : f32
    %11 = vector.broadcast %cst_5 : f32 to vector<8x128xf32>
    %cst_6 = arith.constant 0.000000e+00 : f32
    %12 = vector.broadcast %cst_6 : f32 to vector<8x128xf32>
    %cst_7 = arith.constant 0.000000e+00 : f32
    %13 = vector.broadcast %cst_7 : f32 to vector<8x128xf32>
    %cst_8 = arith.constant 0.000000e+00 : f32
    %14 = vector.broadcast %cst_8 : f32 to vector<8x128xf32>
    %c0_i32_9 = arith.constant 0 : i32
    %15 = arith.addi %6, %c0_i32_9 : i32
    %16 = tpu.assume_multiple %15, 128 : i32
    %c0_10 = arith.constant 0 : index
    %17 = arith.index_cast %16 : i32 to index
    %18 = vector.load %arg5[%c0_10, %17] : memref<16x1024xf32, #tpu.memory_space<vmem>>, vector<16x128xf32>
    %cst_11 = arith.constant dense<0.000000e+00> : vector<8x128xf32>
    %19 = tpu.matmul %3, %18, %cst_11 {dimension_numbers = #tpu.dot_dimension_numbers<[1], [0], [0], [1], [0, 0, 1, 1], [], []>} : vector<8x16xf32>, vector<16x128xf32>, vector<8x128xf32> -> vector<8x128xf32>
    %c0_12 = arith.constant 0 : index
    %c0_13 = arith.constant 0 : index
    %20 = vector.load %arg4[%c0_12, %c0_13] : memref<8x1024xf32, #tpu.memory_space<vmem>>, vector<8x128xf32>
    %21 = arith.subf %20, %19 : vector<8x128xf32>
    %22 = arith.mulf %21, %21 : vector<8x128xf32>
    %23 = arith.addf %7, %22 : vector<8x128xf32>
    %c128_i32 = arith.constant 128 : i32
    %24 = arith.addi %6, %c128_i32 : i32
    %25 = tpu.assume_multiple %24, 128 : i32
    %c0_14 = arith.constant 0 : index
    %26 = arith.index_cast %25 : i32 to index
    %27 = vector.load %arg5[%c0_14, %26] : memref<16x1024xf32, #tpu.memory_space<vmem>>, vector<16x128xf32>
    %cst_15 = arith.constant dense<0.000000e+00> : vector<8x128xf32>
    %28 = tpu.matmul %3, %27, %cst_15 {dimension_numbers = #tpu.dot_dimension_numbers<[1], [0], [0], [1], [0, 0, 1, 1], [], []>} : vector<8x16xf32>, vector<16x128xf32>, vector<8x128xf32> -> vector<8x128xf32>
    %c0_16 = arith.constant 0 : index
    %c128 = arith.constant 128 : index
    %29 = vector.load %arg4[%c0_16, %c128] : memref<8x1024xf32, #tpu.memory_space<vmem>>, vector<8x128xf32>
    %30 = arith.subf %29, %28 : vector<8x128xf32>
    %31 = arith.mulf %30, %30 : vector<8x128xf32>
    %32 = arith.addf %8, %31 : vector<8x128xf32>
    %c256_i32 = arith.constant 256 : i32
    %33 = arith.addi %6, %c256_i32 : i32
    %34 = tpu.assume_multiple %33, 128 : i32
    %c0_17 = arith.constant 0 : index
    %35 = arith.index_cast %34 : i32 to index
    %36 = vector.load %arg5[%c0_17, %35] : memref<16x1024xf32, #tpu.memory_space<vmem>>, vector<16x128xf32>
    %cst_18 = arith.constant dense<0.000000e+00> : vector<8x128xf32>
    %37 = tpu.matmul %3, %36, %cst_18 {dimension_numbers = #tpu.dot_dimension_numbers<[1], [0], [0], [1], [0, 0, 1, 1], [], []>} : vector<8x16xf32>, vector<16x128xf32>, vector<8x128xf32> -> vector<8x128xf32>
    %c0_19 = arith.constant 0 : index
    %c256 = arith.constant 256 : index
    %38 = vector.load %arg4[%c0_19, %c256] : memref<8x1024xf32, #tpu.memory_space<vmem>>, vector<8x128xf32>
    %39 = arith.subf %38, %37 : vector<8x128xf32>
    %40 = arith.mulf %39, %39 : vector<8x128xf32>
    %41 = arith.addf %9, %40 : vector<8x128xf32>
    %c384_i32 = arith.constant 384 : i32
    %42 = arith.addi %6, %c384_i32 : i32
    %43 = tpu.assume_multiple %42, 128 : i32
    %c0_20 = arith.constant 0 : index
    %44 = arith.index_cast %43 : i32 to index
    %45 = vector.load %arg5[%c0_20, %44] : memref<16x1024xf32, #tpu.memory_space<vmem>>, vector<16x128xf32>
    %cst_21 = arith.constant dense<0.000000e+00> : vector<8x128xf32>
    %46 = tpu.matmul %3, %45, %cst_21 {dimension_numbers = #tpu.dot_dimension_numbers<[1], [0], [0], [1], [0, 0, 1, 1], [], []>} : vector<8x16xf32>, vector<16x128xf32>, vector<8x128xf32> -> vector<8x128xf32>
    %c0_22 = arith.constant 0 : index
    %c384 = arith.constant 384 : index
    %47 = vector.load %arg4[%c0_22, %c384] : memref<8x1024xf32, #tpu.memory_space<vmem>>, vector<8x128xf32>
    %48 = arith.subf %47, %46 : vector<8x128xf32>
    %49 = arith.mulf %48, %48 : vector<8x128xf32>
    %50 = arith.addf %10, %49 : vector<8x128xf32>
    %c512_i32 = arith.constant 512 : i32
    %51 = arith.addi %6, %c512_i32 : i32
    %52 = tpu.assume_multiple %51, 128 : i32
    %c0_23 = arith.constant 0 : index
    %53 = arith.index_cast %52 : i32 to index
    %54 = vector.load %arg5[%c0_23, %53] : memref<16x1024xf32, #tpu.memory_space<vmem>>, vector<16x128xf32>
    %cst_24 = arith.constant dense<0.000000e+00> : vector<8x128xf32>
    %55 = tpu.matmul %3, %54, %cst_24 {dimension_numbers = #tpu.dot_dimension_numbers<[1], [0], [0], [1], [0, 0, 1, 1], [], []>} : vector<8x16xf32>, vector<16x128xf32>, vector<8x128xf32> -> vector<8x128xf32>
    %c0_25 = arith.constant 0 : index
    %c512 = arith.constant 512 : index
    %56 = vector.load %arg4[%c0_25, %c512] : memref<8x1024xf32, #tpu.memory_space<vmem>>, vector<8x128xf32>
    %57 = arith.subf %56, %55 : vector<8x128xf32>
    %58 = arith.mulf %57, %57 : vector<8x128xf32>
    %59 = arith.addf %11, %58 : vector<8x128xf32>
    %c640_i32 = arith.constant 640 : i32
    %60 = arith.addi %6, %c640_i32 : i32
    %61 = tpu.assume_multiple %60, 128 : i32
    %c0_26 = arith.constant 0 : index
    %62 = arith.index_cast %61 : i32 to index
    %63 = vector.load %arg5[%c0_26, %62] : memref<16x1024xf32, #tpu.memory_space<vmem>>, vector<16x128xf32>
    %cst_27 = arith.constant dense<0.000000e+00> : vector<8x128xf32>
    %64 = tpu.matmul %3, %63, %cst_27 {dimension_numbers = #tpu.dot_dimension_numbers<[1], [0], [0], [1], [0, 0, 1, 1], [], []>} : vector<8x16xf32>, vector<16x128xf32>, vector<8x128xf32> -> vector<8x128xf32>
    %c0_28 = arith.constant 0 : index
    %c640 = arith.constant 640 : index
    %65 = vector.load %arg4[%c0_28, %c640] : memref<8x1024xf32, #tpu.memory_space<vmem>>, vector<8x128xf32>
    %66 = arith.subf %65, %64 : vector<8x128xf32>
    %67 = arith.mulf %66, %66 : vector<8x128xf32>
    %68 = arith.addf %12, %67 : vector<8x128xf32>
    %c768_i32 = arith.constant 768 : i32
    %69 = arith.addi %6, %c768_i32 : i32
    %70 = tpu.assume_multiple %69, 128 : i32
    %c0_29 = arith.constant 0 : index
    %71 = arith.index_cast %70 : i32 to index
    %72 = vector.load %arg5[%c0_29, %71] : memref<16x1024xf32, #tpu.memory_space<vmem>>, vector<16x128xf32>
    %cst_30 = arith.constant dense<0.000000e+00> : vector<8x128xf32>
    %73 = tpu.matmul %3, %72, %cst_30 {dimension_numbers = #tpu.dot_dimension_numbers<[1], [0], [0], [1], [0, 0, 1, 1], [], []>} : vector<8x16xf32>, vector<16x128xf32>, vector<8x128xf32> -> vector<8x128xf32>
    %c0_31 = arith.constant 0 : index
    %c768 = arith.constant 768 : index
    %74 = vector.load %arg4[%c0_31, %c768] : memref<8x1024xf32, #tpu.memory_space<vmem>>, vector<8x128xf32>
    %75 = arith.subf %74, %73 : vector<8x128xf32>
    %76 = arith.mulf %75, %75 : vector<8x128xf32>
    %77 = arith.addf %13, %76 : vector<8x128xf32>
    %c896_i32 = arith.constant 896 : i32
    %78 = arith.addi %6, %c896_i32 : i32
    %79 = tpu.assume_multiple %78, 128 : i32
    %c0_32 = arith.constant 0 : index
    %80 = arith.index_cast %79 : i32 to index
    %81 = vector.load %arg5[%c0_32, %80] : memref<16x1024xf32, #tpu.memory_space<vmem>>, vector<16x128xf32>
    %cst_33 = arith.constant dense<0.000000e+00> : vector<8x128xf32>
    %82 = tpu.matmul %3, %81, %cst_33 {dimension_numbers = #tpu.dot_dimension_numbers<[1], [0], [0], [1], [0, 0, 1, 1], [], []>} : vector<8x16xf32>, vector<16x128xf32>, vector<8x128xf32> -> vector<8x128xf32>
    %c0_34 = arith.constant 0 : index
    %c896 = arith.constant 896 : index
    %83 = vector.load %arg4[%c0_34, %c896] : memref<8x1024xf32, #tpu.memory_space<vmem>>, vector<8x128xf32>
    %84 = arith.subf %83, %82 : vector<8x128xf32>
    %85 = arith.mulf %84, %84 : vector<8x128xf32>
    %86 = arith.addf %14, %85 : vector<8x128xf32>
    %87 = arith.addf %23, %32 : vector<8x128xf32>
    %88 = arith.addf %41, %50 : vector<8x128xf32>
    %89 = arith.addf %59, %68 : vector<8x128xf32>
    %90 = arith.addf %77, %86 : vector<8x128xf32>
    %91 = arith.addf %87, %88 : vector<8x128xf32>
    %92 = arith.addf %89, %90 : vector<8x128xf32>
    %93 = arith.addf %91, %92 : vector<8x128xf32>
    %c0_35 = arith.constant 0 : index
    %c0_36 = arith.constant 0 : index
    %94 = vector.load %arg6[%c0_35, %c0_36] : memref<8x128xf32, #tpu.memory_space<vmem>>, vector<8x128xf32>
    %95 = arith.addf %94, %93 : vector<8x128xf32>
    %c0_37 = arith.constant 0 : index
    %c0_38 = arith.constant 0 : index
    %96 = vector.load %arg6[%c0_37, %c0_38] : memref<8x128xf32, #tpu.memory_space<vmem>>, vector<8x128xf32>
    tpu.vector_store %arg6[%c0_37, %c0_38], %95 {strides = array<i32>} : memref<8x128xf32, #tpu.memory_space<vmem>>, vector<8x128xf32>,
    return
  }
  func.func @transform_0(%arg0: i32, %arg1: i32, %arg2: i32) -> (i32, i32) {
    %c0_i32 = arith.constant 0 : i32
    %c0_i32_0 = arith.constant 0 : i32
    return %arg0, %c0_i32 : i32, i32
  }
  func.func @transform_1(%arg0: i32, %arg1: i32, %arg2: i32) -> (i32, i32) {
    %c1_i32 = arith.constant 1 : i32
    %0 = arith.muli %arg1, %c1_i32 : i32
    %1 = arith.addi %0, %arg2 : i32
    %c0_i32 = arith.constant 0 : i32
    return %arg0, %1 : i32, i32
  }
  func.func @transform_2(%arg0: i32, %arg1: i32, %arg2: i32) -> (i32, i32) {
    %c0_i32 = arith.constant 0 : i32
    %c0_i32_0 = arith.constant 0 : i32
    %c0_i32_1 = arith.constant 0 : i32
    return %c0_i32, %c0_i32_0 : i32, i32
  }
  func.func @transform_3(%arg0: i32, %arg1: i32, %arg2: i32) -> (i32, i32) {
    %c1_i32 = arith.constant 1 : i32
    %0 = arith.muli %arg0, %c1_i32 : i32
    %1 = arith.addi %0, %arg1 : i32
    %c0_i32 = arith.constant 0 : i32
    %c0_i32_0 = arith.constant 0 : i32
    return %1, %c0_i32 : i32, i32
  }
}

</mosaic_0001>

<bundles_post_ra>
// kernel: tpu_custom_call.1
= control target key start
LH: loop header
LB: loop body
LE: loop exit
PB: predicated region body
PF: predicated region fallthrough
CT: control target
= control target key end

     0   :  { %8 = vsyncpa [#allocation4], 0  ;;  %s1009_s0 = inlined_call_operand.vmem [shape: s32[8,1], index: 0, kind: input, shape index: {}]   ;;  %s1010_s1 = inlined_call_operand.hbm [shape: f32[8,1024], index: 1, kind: input, shape index: {}]   ;;  %s1011_s2 = inlined_call_operand.hbm [shape: f32[16,1024], index: 2, kind: input, shape index: {}]   ;;  %s1012_s3 = inlined_call_operand.hbm [shape: f32[8,128], index: 3, kind: output, shape index: {}]  }
   0x1   :  { %9 = vsyncpa [#allocation7], 0 }
   0x2   :  { %10 = vsyncpa [#allocation5], 0  ;;  %s927_s12 = smov [#allocation3]   ;;  %s928_s14 = smov [#allocation6]  }
   0x3   :  { %s23_s13 = sshll.u32 %s927_s12, 4  ;;  %s32_s15 = sshll.u32 %s928_s14, 4  ;;  %s24_s13 = int_to_ptr.vmem [resolvable:$true] %s23_s13  ;;  %s33_s15 = int_to_ptr.vmem [resolvable:$true] %s32_s15 }
   0x4   :  { %s869_s16 = scalar_lea.vmem %s24_s13, 1024  ;;  %p874_p1 = scmp.lt.s32.totalorder %s24_s13, %s24_s13 }
   0x5   :  { %p870_p0 = scmp.ne.s32.totalorder %s24_s13, %s869_s16  ;;  %p875_p2 = scmp.lt.s32.totalorder %s869_s16, %s869_s16 }
   0x7   :  { %p876_p3 = por %p875_p2, %p874_p1 }
   0x9   :  { %p877_p4 = pnand %p876_p3, %p870_p0 }
   0xb   :  { %880 = shalt.err (!%p877_p4)
}
   0xc   :  { %26 = dma.hbm_to_vmem [thread:$0]  %s1010_s1, 1024, %s24_s13, [#allocation4]  }
   0xd   :  { %s889_s19 = scalar_lea.vmem %s33_s15, 2048  ;;  %p894_p6 = scmp.lt.s32.totalorder %s33_s15, %s33_s15 }
   0xe   :  { %p890_p5 = scmp.ne.s32.totalorder %s33_s15, %s889_s19  ;;  %p895_p7 = scmp.lt.s32.totalorder %s889_s19, %s889_s19 }
  0x10   :  { %p896_p8 = por %p895_p7, %p894_p6 }
  0x12   :  { %p897_p9 = pnand %p896_p8, %p890_p5 }
  0x14   :  { %900 = shalt.err (!%p897_p9)
}
  0x15   :  { %s929_s20 = smov 1024   ;;  %s930_s21 = smov 64  }
  0x16   :  { %38 = dma.hbm_to_vmem [thread:$0]  %s1011_s2, 2048, %s33_s15, [#allocation7], %s929_s20, %s929_s20, %s930_s21  }
  0x17   :  { %921 = dma.done.wait [#allocation4], 1024  }
  0x18   :  { %922 = vsyncadd [#allocation4], 4294966272 }
  0x19   :  { %923 = dma.done.wait [#allocation7], 2048  }
  0x1a   :  { %924 = vsyncadd [#allocation7], 4294965248  ;;  %v931_v0 = vmov 0   ;;  %v932_v1 = vmov 0.0   ;;  %v52_v2 = vld [vmem:[%s1009_s0] sm:$0xff]  ;;  %v72_v3 = vld [vmem:[#allocation6 + $0x40] sm:$0xff]  ;;  %v53_v7 = vlaneseq }
  0x1b   :  { %860 = vset.pattern.permute.xlu0 %v931_v0  ;;  %796 = vmatprep.subr.mxu0 %v932_v1  ;;  %v157_v4 = vld [vmem:[#allocation6 + $0x48] sm:$0xff]  ;;  %vm933_vm0 = vmmov 0   ;;  %v71_v5 = vld [vmem:[#allocation6] sm:$0xff]  ;;  %vm61_vm1 = vcmask 130048   ;;  %v238_v11 = vld [vmem:[#allocation6 + $0x50] sm:$0xff]  ;;  %s934_s0 = smov [#allocation8]  }
  0x1c   :  { %803 = vmatprep.subr.mxu1 %v932_v1  ;;  %800 = vmatprep.mubr.msk.f32.mxu0 %vm933_vm0, %v932_v1  ;;  %v156_v6 = vld [vmem:[#allocation6 + $0x8] sm:$0xff]  ;;  %v54_v8 = vand.u32 127, %v53_v7  ;;  %v319_v12 = vld [vmem:[#allocation6 + $0x58] sm:$0xff]  ;;  %v237_v14 = vld [vmem:[#allocation6 + $0x10] sm:$0xff]  ;;  %s737_s2 = sshll.u32 %s934_s0, 4  ;;  %s738_s2 = int_to_ptr.vmem [resolvable:$true] %s737_s2 }
  0x1d   :  { %807 = vmatprep.mubr.msk.f32.mxu1 %vm933_vm0, %v932_v1  ;;  %56 = vperm.xlu0 %860, %v52_v2   ;;  %v318_v15 = vld [vmem:[#allocation6 + $0x18] sm:$0xff]  ;;  %v400_v16 = vld [vmem:[#allocation6 + $0x60] sm:$0xff]  ;;  %v481_v17 = vld [vmem:[#allocation6 + $0x68] sm:$0xff]  ;;  %s901_s25 = scalar_lea.vmem %s738_s2, 128  ;;  %p906_p11 = scmp.lt.s32.totalorder %s738_s2, %s738_s2 }
  0x1e   :  { %797 = vmatpush3.msra.mxu0 %v72_v3  ;;  %804 = vmatpush3.msra.mxu1 %v157_v4  ;;  %v399_v18 = vld [vmem:[#allocation6 + $0x20] sm:$0xff]  ;;  %v480_v19 = vld [vmem:[#allocation6 + $0x28] sm:$0xff]  ;;  %v562_v20 = vld [vmem:[#allocation6 + $0x70] sm:$0xff]  ;;  %p902_p10 = scmp.ne.s32.totalorder %s738_s2, %s901_s25  ;;  %p907_p12 = scmp.lt.s32.totalorder %s901_s25, %s901_s25 }
  0x1f   :  { %798 = vmatprep.subr.mxu0 %v932_v1  ;;  %805 = vmatprep.subr.mxu1 %v932_v1  ;;  %v643_v21 = vld [vmem:[#allocation6 + $0x78] sm:$0xff]  ;;  %v561_v22 = vld [vmem:[#allocation6 + $0x30] sm:$0xff]  ;;  %v147_v34 = vld [vmem:[#allocation3] sm:$0xff] }
  0x20   :  { %799 = vmatpush3.msra.mxu0 %v71_v5  ;;  %806 = vmatpush3.msra.mxu1 %v156_v6  ;;  %v642_v23 = vld [vmem:[#allocation6 + $0x38] sm:$0xff]  ;;  %v309_v32 = vld [vmem:[#allocation3 + $0x10] sm:$0xff]  ;;  %v228_v35 = vld [vmem:[#allocation3 + $0x8] sm:$0xff]  ;;  %p908_p13 = por %p907_p12, %p906_p11 }
  0x21   :  { %810 = vmatprep.subr.mxu0 %v932_v1  ;;  %817 = vmatprep.subr.mxu1 %v932_v1  ;;  %v390_v33 = vld [vmem:[#allocation3 + $0x18] sm:$0xff]  ;;  %v471_v36 = vld [vmem:[#allocation3 + $0x20] sm:$0xff]  ;;  %v552_v37 = vld [vmem:[#allocation3 + $0x28] sm:$0xff] }
  0x22   :  { %v633_v48 = vld [vmem:[#allocation3 + $0x30] sm:$0xff]  ;;  %v714_v49 = vld [vmem:[#allocation3 + $0x38] sm:$0xff]  ;;  %p909_p0 = pnand %p908_p13, %p902_p10 }
  0x98   :  { %v57_v9 = vpop.permute.xlu0 %56 }
  0x99   :  { %vm58_vm2 = vcmp.eq.s32.totalorder %v57_v9, %v54_v8 }
  0x9a   :  { %v763_v10 = vsel %vm58_vm2, 1.0, %v932_v1 }
  0x9b   :  { %62 = vst.msk [vmem:[#allocation2] sm:$0xff] %vm61_vm1, %v763_v10 }
  0xa2   :  { %v64_v13 = vld [vmem:[#allocation2] sm:$0xff] }
  0xa3   :  { %801 = vmatmul.mubr.msk.f32.vlgmr.msra.gmra.mxu0 %vm61_vm1, %v64_v13  ;;  %808 = vmatmul.mubr.msk.f32.vlgmr.msra.gmra.mxu1 %vm61_vm1, %v64_v13 }
  0xa4   :  { %811 = vmatpush3.msra.mxu0 %v238_v11  ;;  %818 = vmatpush3.msra.mxu1 %v319_v12 }
  0xa5   :  { %812 = vmatprep.subr.mxu0 %v932_v1  ;;  %819 = vmatprep.subr.mxu1 %v932_v1 }
  0xa6   :  { %813 = vmatpush3.msra.mxu0 %v237_v14  ;;  %820 = vmatpush3.msra.mxu1 %v318_v15 }
  0xa7   :  { %814 = vmatprep.mubr.msk.f32.mxu0 %vm933_vm0, %v932_v1  ;;  %821 = vmatprep.mubr.msk.f32.mxu1 %vm933_vm0, %v932_v1 }
  0xa8   :  { %824 = vmatprep.subr.mxu0 %v932_v1  ;;  %831 = vmatprep.subr.mxu1 %v932_v1 }
  0xa9   :  { %815 = vmatmul.mubr.msk.f32.vlgmr.msra.gmra.mxu0 %vm61_vm1, %v64_v13  ;;  %822 = vmatmul.mubr.msk.f32.vlgmr.msra.gmra.mxu1 %vm61_vm1, %v64_v13 }
  0xaa   :  { %825 = vmatpush3.msra.mxu0 %v400_v16  ;;  %832 = vmatpush3.msra.mxu1 %v481_v17 }
  0xab   :  { %826 = vmatprep.subr.mxu0 %v932_v1  ;;  %833 = vmatprep.subr.mxu1 %v932_v1 }
  0xac   :  { %827 = vmatpush3.msra.mxu0 %v399_v18  ;;  %834 = vmatpush3.msra.mxu1 %v480_v19 }
  0xad   :  { %828 = vmatprep.mubr.msk.f32.mxu0 %vm933_vm0, %v932_v1  ;;  %835 = vmatprep.mubr.msk.f32.mxu1 %vm933_vm0, %v932_v1 }
  0xae   :  { %838 = vmatprep.subr.mxu0 %v932_v1  ;;  %845 = vmatprep.subr.mxu1 %v932_v1 }
  0xaf   :  { %829 = vmatmul.mubr.msk.f32.vlgmr.msra.gmra.mxu0 %vm61_vm1, %v64_v13  ;;  %836 = vmatmul.mubr.msk.f32.vlgmr.msra.gmra.mxu1 %vm61_vm1, %v64_v13 }
  0xb0   :  { %839 = vmatpush3.msra.mxu0 %v562_v20  ;;  %846 = vmatpush3.msra.mxu1 %v643_v21 }
  0xb1   :  { %840 = vmatprep.subr.mxu0 %v932_v1  ;;  %847 = vmatprep.subr.mxu1 %v932_v1 }
  0xb2   :  { %841 = vmatpush3.msra.mxu0 %v561_v22  ;;  %848 = vmatpush3.msra.mxu1 %v642_v23 }
  0xb3   :  { %842 = vmatprep.mubr.msk.f32.mxu0 %vm933_vm0, %v932_v1  ;;  %849 = vmatprep.mubr.msk.f32.mxu1 %vm933_vm0, %v932_v1 }
  0xb4   :  { %843 = vmatmul.mubr.msk.f32.vlgmr.msra.gmra.mxu0 %vm61_vm1, %v64_v13  ;;  %850 = vmatmul.mubr.msk.f32.vlgmr.msra.gmra.mxu1 %vm61_vm1, %v64_v13 }
 0x163   :  { %v143_v24 = vpop.f32.mrf.mxu0  ;;  %v224_v25 = vpop.f32.mrf.mxu1 }
 0x164   :  { %v148_v42 = vsub.f32 %v147_v34, %v143_v24  ;;  %v229_v43 = vsub.f32 %v228_v35, %v224_v25 }
 0x165   :  { %v802_v26 = vpop.f32.mrf.mxu0  ;;  %v809_v27 = vpop.f32.mrf.mxu1 }
 0x166   :  { %v149_v52 = vmul.f32 %v148_v42, %v148_v42  ;;  %v230_v53 = vmul.f32 %v229_v43, %v229_v43 }
 0x168   :  { %v718_v1 = vadd.f32 %v230_v53, %v149_v52 }
 0x169   :  { %v305_v28 = vpop.f32.mrf.mxu0  ;;  %v386_v29 = vpop.f32.mrf.mxu1 }
 0x16a   :  { %v310_v38 = vsub.f32 %v309_v32, %v305_v28  ;;  %v391_v39 = vsub.f32 %v390_v33, %v386_v29 }
 0x16b   :  { %v816_v30 = vpop.f32.mrf.mxu0  ;;  %v823_v31 = vpop.f32.mrf.mxu1 }
 0x16c   :  { %v311_v50 = vmul.f32 %v310_v38, %v310_v38  ;;  %v392_v51 = vmul.f32 %v391_v39, %v391_v39 }
 0x16e   :  { %v719_v62 = vadd.f32 %v392_v51, %v311_v50 }
 0x16f   :  { %v467_v40 = vpop.f32.mrf.mxu0  ;;  %v548_v41 = vpop.f32.mrf.mxu1 }
 0x170   :  { %v472_v44 = vsub.f32 %v471_v36, %v467_v40  ;;  %v553_v45 = vsub.f32 %v552_v37, %v548_v41  ;;  %v722_v4 = vadd.f32 %v719_v62, %v718_v1 }
 0x171   :  { %v830_v46 = vpop.f32.mrf.mxu0  ;;  %v837_v47 = vpop.f32.mrf.mxu1 }
 0x172   :  { %v473_v56 = vmul.f32 %v472_v44, %v472_v44  ;;  %v554_v57 = vmul.f32 %v553_v45, %v553_v45 }
 0x174   :  { %v629_v54 = vpop.f32.mrf.mxu0  ;;  %v710_v55 = vpop.f32.mrf.mxu1  ;;  %v720_v2 = vadd.f32 %v554_v57, %v473_v56 }
 0x175   :  { %v634_v58 = vsub.f32 %v633_v48, %v629_v54  ;;  %v715_v59 = vsub.f32 %v714_v49, %v710_v55 }
 0x176   :  { %v844_v60 = vpop.f32.mrf.mxu0  ;;  %v851_v61 = vpop.f32.mrf.mxu1 }
 0x177   :  { %v635_v63 = vmul.f32 %v634_v58, %v634_v58  ;;  %v716_v0 = vmul.f32 %v715_v59, %v715_v59 }
 0x179   :  { %v721_v3 = vadd.f32 %v716_v0, %v635_v63 }
 0x17b   :  { %v723_v5 = vadd.f32 %v721_v3, %v720_v2 }
 0x17d   :  { %v724_v6 = vadd.f32 %v723_v5, %v722_v4 }
 0x17f   :  { %727 = vst [vmem:[#allocation8] sm:$0xff] %v724_v6 }
 0x180   :  { %912 = shalt.err (!%p909_p0)
}
 0x181   :  { %740 = dma.vmem_to_hbm [thread:$0]  %s738_s2, 128, %s1012_s3, [#allocation5]  }
 0x182   :  { %925 = dma.done.wait [#allocation5], 128  }
 0x183   :  { %926 = vsyncadd [#allocation5], 4294967168 }
 0x184   :  { %744 = vsyncpa [#allocation4], 1 }
 0x185   :  { %745 = vsyncpa [#allocation7], 1 }
 0x186   :  { %746 = vsyncpa [#allocation5], 1 }

</bundles_post_ra>
